<compile_context>
chip_gen: v5e
topology: v5e:2x2
jax: 0.10.0
libtpu: 0.0.40
codegen_flags: <defaults>
</compile_context>

<pallas_src>
import jax
import jax.numpy as jnp
from jax.experimental import pallas as pl
from jax.experimental.pallas import tpu as pltpu


def _round_up(x, m):
    return ((x + m - 1) // m) * m


def gmf_kernel(bias_ref, w_ref, u_ref, v_ref, o_ref):
    # bias_ref: (1,) f32 in SMEM (scalar prefetch).
    # w_ref:    (Dp, 1) f32 in VMEM, constant across the grid (affine weight column;
    #           padded feature rows carry weight 0).
    # u_ref, v_ref: (Dp, Bt) tiles (f32 or bf16), batch on the lane axis.
    u = u_ref[...].astype(jnp.float32)
    v = v_ref[...].astype(jnp.float32)
    prod = u * v * w_ref[...]                         # VPU elementwise, (Dp,1) broadcasts over lanes
    logit = jnp.sum(prod, axis=0, keepdims=True)      # (1, Bt) sublane reduce (XLU)
    o_ref[...] = jax.nn.sigmoid(logit + bias_ref[0])  # EUP exp; lane-dense (1, Bt) store


def gmf_forward(user_indices, item_indices, user_table, item_table, weight, bias,
                *, block_b=32768, input_dtype=jnp.float32):
    """user_indices/item_indices: int (B,). Returns float32 (B, 1)."""
    assert block_b % 128 == 0, "block_b must be a multiple of 128 (lane width)"
    B = user_indices.shape[0]
    D = user_table.shape[1]

    input_dtype = jnp.dtype(input_dtype)
    sub_pack = {4: 8, 2: 16, 1: 32}[input_dtype.itemsize]   # sublane packing granularity
    Dp = _round_up(D, sub_pack)

    B_pad = _round_up(B, 128)
    bt = min(block_b, B_pad)
    B_pad = _round_up(B_pad, bt)
    grid_b = B_pad // bt

    # Pre-transpose/pad the (tiny) tables once, then gather COLUMNS so the gather
    # itself produces the lane-dense (Dp, B_pad) layout the kernel consumes — no
    # separate transpose+pad pass over the activations.
    u_tab_t = jnp.zeros((Dp, user_table.shape[0]), input_dtype).at[:D, :].set(
        user_table.T.astype(input_dtype))
    i_tab_t = jnp.zeros((Dp, item_table.shape[0]), input_dtype).at[:D, :].set(
        item_table.T.astype(input_dtype))

    pad = B_pad - B
    uid = jnp.pad(user_indices.astype(jnp.int32), (0, pad))   # padded lanes use index 0;
    iid = jnp.pad(item_indices.astype(jnp.int32), (0, pad))   # their outputs are sliced off
    u_t = jnp.take(u_tab_t, uid, axis=1)                      # (Dp, B_pad)
    v_t = jnp.take(i_tab_t, iid, axis=1)                      # (Dp, B_pad)

    # Affine weight as a (Dp, 1) column (padded rows -> 0); bias as SMEM scalar.
    w_col = jnp.zeros((Dp, 1), jnp.float32).at[:D, 0].set(
        jnp.asarray(weight, jnp.float32).reshape(-1))
    bias_s = jnp.asarray(bias, jnp.float32).reshape(-1)[:1]

    in_itemsize = input_dtype.itemsize
    cost = pl.CostEstimate(
        flops=3 * B_pad * Dp,                                  # 2 muls + reduce-add per element
        transcendentals=B_pad,                                 # sigmoid
        bytes_accessed=2 * B_pad * Dp * in_itemsize + B_pad * 4 + Dp * 4 + 4,
    )

    grid_spec = pltpu.PrefetchScalarGridSpec(
        num_scalar_prefetch=1,                                 # bias lands in SMEM
        grid=(grid_b,),
        in_specs=[
            pl.BlockSpec((Dp, 1), lambda i, b: (0, 0)),        # weight column, resident
            pl.BlockSpec((Dp, bt), lambda i, b: (0, i)),       # user slab tile
            pl.BlockSpec((Dp, bt), lambda i, b: (0, i)),       # item slab tile
        ],
        out_specs=pl.BlockSpec((1, bt), lambda i, b: (0, i)),
    )

    out = pl.pallas_call(
        gmf_kernel,
        out_shape=jax.ShapeDtypeStruct((1, B_pad), jnp.float32),
        grid_spec=grid_spec,
        compiler_params=pltpu.CompilerParams(
            dimension_semantics=("parallel",)),                # independent batch tiles
        cost_estimate=cost,
    )(bias_s, w_col, u_t, v_t)

    return out[0, :B].reshape(B, 1)


if __name__ == "__main__":
    # Config consistent with GMF.__init__ (the original PyTorch code sizes the item
    # table with num_users as well — reproduced faithfully).
    num_users = 32
    latent_dim_gmf = 8
    batch = 8

    key = jax.random.PRNGKey(0)
    k_u, k_i, k_w, k_b, k_ui, k_ii = jax.random.split(key, 6)

    # torch.nn.Embedding default init: N(0, 1)
    user_table = jax.random.normal(k_u, (num_users, latent_dim_gmf), dtype=jnp.float32)
    item_table = jax.random.normal(k_i, (num_users, latent_dim_gmf), dtype=jnp.float32)

    # torch.nn.Linear(D, 1) default init: U(-1/sqrt(D), 1/sqrt(D))
    bound = 1.0 / (latent_dim_gmf ** 0.5)
    weight = jax.random.uniform(k_w, (1, latent_dim_gmf), jnp.float32, -bound, bound)
    bias = jax.random.uniform(k_b, (1, 1), jnp.float32, -bound, bound)

    user_indices = jax.random.randint(k_ui, (batch,), 0, num_users, dtype=jnp.int32)
    item_indices = jax.random.randint(k_ii, (batch,), 0, num_users, dtype=jnp.int32)

    # Pure-JAX reference.
    u = user_table[user_indices]
    v = item_table[item_indices]
    ref = jax.nn.sigmoid((u * v) @ weight.T + bias[0, 0])

    # f32 path (exact PyTorch semantics).
    gmf_fn = jax.jit(gmf_forward)
    rating = jax.block_until_ready(
        gmf_fn(user_indices, item_indices, user_table, item_table, weight, bias))
    assert rating.shape == (batch, 1)
    assert jnp.allclose(rating, ref, atol=1e-5), "f32 kernel mismatch vs reference"

    # bf16-input path (halves HBM bytes for the two dominant inputs; compute in f32).
    gmf_fn_bf16 = jax.jit(
        lambda ui, ii, ut, it, w, b: gmf_forward(ui, ii, ut, it, w, b,
                                                 input_dtype=jnp.bfloat16))
    rating_bf16 = jax.block_until_ready(
        gmf_fn_bf16(user_indices, item_indices, user_table, item_table, weight, bias))
    assert jnp.allclose(rating_bf16, ref, atol=2e-2), "bf16 kernel mismatch vs reference"

    print("KERNEL_OK")
</pallas_src>

<mosaic_0001>
module attributes {stable_mosaic.version = 11 : i64} {
  func.func @gmf_kernel(%arg0: i32, %arg1: memref<1xf32, #tpu.memory_space<smem>>, %arg2: memref<8x1xf32, #tpu.memory_space<vmem>>, %arg3: memref<8x128xf32, #tpu.memory_space<vmem>>, %arg4: memref<8x128xf32, #tpu.memory_space<vmem>>, %arg5: memref<1x128xf32, #tpu.memory_space<vmem>>) attributes {dimension_semantics = [#tpu.dimension_semantics<parallel>], iteration_bounds = array<i64: 1>, scalar_prefetch = 1 : i64, scratch_operands = 0 : i64, tpu.core_type = #tpu.core_type<tc>, window_params = [{pipeline_mode = #tpu.pipeline_mode<synchronous>, transform_indices = @transform_0, window_bounds = array<i64: 8, 1>}, {transform_indices = @transform_1, window_bounds = array<i64: 8, 128>}, {transform_indices = @transform_2, window_bounds = array<i64: 8, 128>}, {transform_indices = @transform_3, window_bounds = array<i64: 1, 128>}]} {
    %c0 = arith.constant 0 : index
    %c0_0 = arith.constant 0 : index
    %0 = vector.load %arg3[%c0, %c0_0] : memref<8x128xf32, #tpu.memory_space<vmem>>, vector<8x128xf32>
    %c0_1 = arith.constant 0 : index
    %c0_2 = arith.constant 0 : index
    %1 = vector.load %arg4[%c0_1, %c0_2] : memref<8x128xf32, #tpu.memory_space<vmem>>, vector<8x128xf32>
    %2 = arith.mulf %0, %1 : vector<8x128xf32>
    %c0_3 = arith.constant 0 : index
    %c0_4 = arith.constant 0 : index
    %3 = vector.load %arg2[%c0_3, %c0_4] : memref<8x1xf32, #tpu.memory_space<vmem>>, vector<8x1xf32>
    %4 = vector.broadcast %3 : vector<8x1xf32> to vector<8x128xf32>
    %5 = arith.mulf %2, %4 : vector<8x128xf32>
    %cst = arith.constant dense<0.000000e+00> : vector<128xf32>
    %6 = vector.multi_reduction <add>, %5, %cst [0] : vector<8x128xf32> to vector<128xf32>
    %7 = vector.shape_cast %6 : vector<128xf32> to vector<1x128xf32>
    %c0_5 = arith.constant 0 : index
    %8 = memref.load %arg1[%c0_5] : memref<1xf32, #tpu.memory_space<smem>>
    %9 = vector.broadcast %8 : f32 to vector<1x128xf32>
    %10 = arith.addf %7, %9 : vector<1x128xf32>
    %11 = arith.negf %10 : vector<1x128xf32>
    %12 = math.exp %11 : vector<1x128xf32>
    %cst_6 = arith.constant 1.000000e+00 : f32
    %13 = vector.broadcast %cst_6 : f32 to vector<1x128xf32>
    %14 = arith.addf %13, %12 : vector<1x128xf32>
    %15 = arith.divf %13, %14 : vector<1x128xf32>
    %c0_7 = arith.constant 0 : index
    %c0_8 = arith.constant 0 : index
    %16 = vector.load %arg5[%c0_7, %c0_8] : memref<1x128xf32, #tpu.memory_space<vmem>>, vector<1x128xf32>
    tpu.vector_store %arg5[%c0_7, %c0_8], %15 {strides = array<i32>} : memref<1x128xf32, #tpu.memory_space<vmem>>, vector<1x128xf32>,
    return
  }
  func.func @transform_0(%arg0: i32, %arg1: memref<1xf32, #tpu.memory_space<smem>>) -> (i32, i32) {
    %c0_i32 = arith.constant 0 : i32
    %c0_i32_0 = arith.constant 0 : i32
    %c0_i32_1 = arith.constant 0 : i32
    return %c0_i32, %c0_i32_0 : i32, i32
  }
  func.func @transform_1(%arg0: i32, %arg1: memref<1xf32, #tpu.memory_space<smem>>) -> (i32, i32) {
    %c0_i32 = arith.constant 0 : i32
    %c0_i32_0 = arith.constant 0 : i32
    return %c0_i32, %arg0 : i32, i32
  }
  func.func @transform_2(%arg0: i32, %arg1: memref<1xf32, #tpu.memory_space<smem>>) -> (i32, i32) {
    %c0_i32 = arith.constant 0 : i32
    %c0_i32_0 = arith.constant 0 : i32
    return %c0_i32, %arg0 : i32, i32
  }
  func.func @transform_3(%arg0: i32, %arg1: memref<1xf32, #tpu.memory_space<smem>>) -> (i32, i32) {
    %c0_i32 = arith.constant 0 : i32
    %c0_i32_0 = arith.constant 0 : i32
    return %c0_i32, %arg0 : i32, i32
  }
}

</mosaic_0001>

<bundles_post_ra>
// kernel: gmf_forward.1
= control target key start
LH: loop header
LB: loop body
LE: loop exit
PB: predicated region body
PF: predicated region fallthrough
CT: control target
= control target key end

     0   :  { %v66_v0 = vmov 0   ;;  %s107_s1 = inlined_call_operand.vmem [shape: f32[8,1], index: 1, kind: input, shape index: {}]   ;;  %s108_s2 = inlined_call_operand.vmem [shape: f32[8,128], index: 2, kind: input, shape index: {}]   ;;  %s109_s3 = inlined_call_operand.vmem [shape: f32[8,128], index: 3, kind: input, shape index: {}]   ;;  %s110_s0 = inlined_call_operand.<no memory space> [shape: f32[1], index: 0, kind: input, shape index: {}]   ;;  %s111_s4 = inlined_call_operand.vmem [shape: f32[1,128], index: 4, kind: output, shape index: {}]  }
   0x1   :  { %61 = vset.pattern.permute.xlu0 %v66_v0  ;;  %v19_v1 = vld [vmem:[%s107_s1] sm:$0xff]  ;;  %v33_v12 = vstv %s110_s0 }
   0x2   :  { %22 = vperm.xlu0 %61, %v19_v1   ;;  %v16_v2 = vld [vmem:[%s108_s2] sm:$0xff] }
   0x3   :  { %v17_v3 = vld [vmem:[%s109_s3] sm:$0xff] }
   0x4   :  { %v18_v4 = vmul.f32 %v17_v3, %v16_v2 }
  0x74   :  { %v23_v5 = vpop.permute.xlu0 %22 }
  0x75   :  { %v25_v6 = vmul.f32 %v23_v5, %v18_v4 }
  0x77   :  { %v26_v7 = vrot.slane %v25_v6, 4 }
  0x79   :  { %v27_v8 = vadd.f32 %v26_v7, %v25_v6 }
  0x7b   :  { %v28_v9 = vrot.slane %v27_v8, 2 }
  0x7d   :  { %v29_v10 = vadd.f32 %v28_v9, %v27_v8 }
  0x7f   :  { %v30_v11 = vrot.slane %v29_v10, 1 }
  0x81   :  { %v31_v13 = vadd.f32 %v30_v11, %v29_v10 }
  0x83   :  { %v34_v14 = vadd.f32 %v33_v12, %v31_v13 }
  0x85   :  { %v59_v15 = vmul.f32 -1.442695, %v34_v14 }
  0x87   :  { %62 = vpow2.f32 %v59_v15 }
  0x8d   :  { %v63_v16 = vpop.eup %62 }
  0x8e   :  { %v38_v17 = vadd.f32 1.0, %v63_v16 }
  0x90   :  { %64 = vrcp.f32 %v38_v17  ;;  %v50_v21 = vand.u32 2147483648, %v38_v17  ;;  %v48_v23 = vand.u32 2147483647, %v38_v17  ;;  %vm44_vm1 = vweird.f32 %v38_v17 }
  0x92   :  { %v51_v25 = vor.u32 1.1754944e-38, %v50_v21  ;;  %vm49_vm3 = vcmp.eq.f32.partialorder %v48_v23, 8.507059e+37 }
  0x96   :  { %v65_v18 = vpop.eup %64 }
  0x97   :  { %v40_v19 = vmul.f32 %v65_v18, %v38_v17  ;;  %vm45_vm0 = vweird.f32 %v65_v18 }
  0x98   :  { %vm46_vm2 = vmor %vm44_vm1, %vm45_vm0 }
  0x99   :  { %v41_v20 = vsub.f32 1.0, %v40_v19 }
  0x9b   :  { %v42_v22 = vmul.f32 %v65_v18, %v41_v20 }
  0x9d   :  { %v43_v24 = vadd.f32 %v65_v18, %v42_v22 }
  0x9f   :  { %v47_v26 = vsel %vm46_vm2, %v65_v18, %v43_v24 }
  0xa0   :  { %v52_v27 = vsel %vm49_vm3, %v51_v25, %v47_v26 }
  0xa1   :  { %54 = vst [vmem:[%s111_s4] sm:$0x1] %v52_v27 }

</bundles_post_ra>
